<compile_context>
chip_gen: v6e
topology: v6e:2x2x1
jax: 0.10.0
libtpu: 0.0.40
codegen_flags: <defaults>
</compile_context>

<pallas_src>
import jax
import jax.numpy as jnp
from jax.experimental import pallas as pl
from jax.experimental.pallas import tpu as pltpu

_LANE = 128
_SUBLANE = 8


def _sigmoid_kernel(x_ref, o_ref):
    x = x_ref[...]
    if x.dtype not in (jnp.float32, jnp.bfloat16):
        # integer / fp16 / fp8 inputs: compute in f32
        x = x.astype(jnp.float32)
    # TODO(synk): on v5e (no bf16 VPU/EUP) upcasting bf16 inputs to f32 may be
    # marginally better; the Mosaic lowering handles native bf16 either way.
    half = jnp.asarray(0.5, dtype=x.dtype)
    one = jnp.asarray(1.0, dtype=x.dtype)
    # sigmoid(x) = 0.5 * (1 + tanh(0.5 * x)) -> a single EUP transcendental.
    y = half * (jnp.tanh(x * half) + one)
    o_ref[...] = y.astype(o_ref.dtype)


def dlh_forward(x, *, target_block_bytes=4 << 20):
    """Apply Sigmoid elementwise to `x` (any shape) via a Pallas TPU kernel."""
    orig_shape = x.shape
    in_dtype = x.dtype
    # PyTorch's Sigmoid never returns integers; promote non-float inputs.
    out_dtype = in_dtype if jnp.issubdtype(in_dtype, jnp.floating) else jnp.float32

    n = x.size
    if n == 0:
        return x.astype(out_dtype)

    in_itemsize = jnp.dtype(in_dtype).itemsize
    out_itemsize = jnp.dtype(out_dtype).itemsize
    itemsize = max(in_itemsize, out_itemsize)

    # Sublane packing quantum: 8 rows for 32-bit, 16 for bf16, 32 for int8/fp8.
    row_quantum = max(_SUBLANE, 32 // min(in_itemsize, out_itemsize))
    quantum = row_quantum * _LANE

    flat = x.reshape(-1)

    # Ragged-tail fallback only: pad up to one full packed tile.  For typical
    # conv-style shapes (element count a multiple of the quantum) this is a
    # no-op and the whole path is a zero-copy reshape.
    pad = (-n) % quantum
    if pad:
        # TODO(synk): an in-kernel masked tail store would remove this extra
        # pad/slice HBM pass for ragged sizes; the demo shapes never hit it.
        flat = jnp.pad(flat, (0, pad))
    total = n + pad

    # Pick a wide lane-dense last dim so output stores are unmasked `vst`s.
    m = total // quantum
    k = 1
    for cand in (64, 32, 16, 8, 4, 2):
        if m % cand == 0:
            k = cand
            break
    cols = _LANE * k
    rows = total // cols  # multiple of row_quantum by construction

    x2d = flat.reshape(rows, cols)

    # Block rows: multiple of row_quantum, sized to ~target_block_bytes.
    tr = (target_block_bytes // (cols * itemsize)) // row_quantum * row_quantum
    tr = max(row_quantum, min(rows, tr))

    # For inputs large enough to care about, guarantee >= 2 grid steps so both
    # v7x TensorCores get work under dimension_semantics=("parallel",).
    if total * itemsize >= (1 << 20) and tr >= rows and rows >= 2 * row_quantum:
        tr = max(row_quantum, (rows // 2) // row_quantum * row_quantum)

    grid = (pl.cdiv(rows, tr),)  # Pallas masks the partial edge block.

    cost = pl.CostEstimate(
        flops=3 * total,                 # 2 muls + 1 add per element
        transcendentals=total,           # one tanh per element
        bytes_accessed=total * (in_itemsize + out_itemsize),
    )

    out2d = pl.pallas_call(
        _sigmoid_kernel,
        out_shape=jax.ShapeDtypeStruct((rows, cols), out_dtype),
        grid_spec=pltpu.PrefetchScalarGridSpec(
            num_scalar_prefetch=0,
            grid=grid,
            in_specs=[pl.BlockSpec((tr, cols), lambda i: (i, 0))],
            out_specs=pl.BlockSpec((tr, cols), lambda i: (i, 0)),
        ),
        compiler_params=pltpu.CompilerParams(
            dimension_semantics=("parallel",),
            vmem_limit_bytes=40 << 20,
        ),
        cost_estimate=cost,
    )(x2d)

    out_flat = out2d.reshape(-1)
    if pad:
        out_flat = out_flat[:n]
    return out_flat.reshape(orig_shape)


if __name__ == "__main__":
    key = jax.random.PRNGKey(0)
    # NCHW input, consistent with typical PyTorch conv-style usage.
    x = jax.random.normal(key, (2, 4, 16, 16), dtype=jnp.float32)

    out = dlh_forward(x)
    jax.block_until_ready(out)

    # Sanity check against plain-JAX reference sigmoid.
    ref = jax.nn.sigmoid(x)
    assert out.shape == x.shape and out.dtype == x.dtype
    assert jnp.max(jnp.abs(out - ref)) < 1e-5

    print("KERNEL_OK")
</pallas_src>

<mosaic_0001>
module attributes {stable_mosaic.version = 11 : i64} {
  func.func @_sigmoid_kernel(%arg0: i32, %arg1: memref<8x256xf32, #tpu.memory_space<vmem>>, %arg2: memref<8x256xf32, #tpu.memory_space<vmem>>) attributes {dimension_semantics = [#tpu.dimension_semantics<parallel>], iteration_bounds = array<i64: 1>, scalar_prefetch = 0 : i64, scratch_operands = 0 : i64, tpu.core_type = #tpu.core_type<tc>, window_params = [{transform_indices = @transform_0, window_bounds = array<i64: 8, 256>}, {transform_indices = @transform_1, window_bounds = array<i64: 8, 256>}]} {
    %c0 = arith.constant 0 : index
    %c0_0 = arith.constant 0 : index
    %0 = vector.load %arg1[%c0, %c0_0] : memref<8x256xf32, #tpu.memory_space<vmem>>, vector<8x256xf32>
    %cst = arith.constant 5.000000e-01 : f32
    %1 = vector.broadcast %cst : f32 to vector<8x256xf32>
    %2 = arith.mulf %0, %1 : vector<8x256xf32>
    %3 = math.tanh %2 : vector<8x256xf32>
    %cst_1 = arith.constant 1.000000e+00 : f32
    %4 = vector.broadcast %cst_1 : f32 to vector<8x256xf32>
    %5 = arith.addf %3, %4 : vector<8x256xf32>
    %cst_2 = arith.constant 5.000000e-01 : f32
    %6 = vector.broadcast %cst_2 : f32 to vector<8x256xf32>
    %7 = arith.mulf %6, %5 : vector<8x256xf32>
    %c0_3 = arith.constant 0 : index
    %c0_4 = arith.constant 0 : index
    %8 = vector.load %arg2[%c0_3, %c0_4] : memref<8x256xf32, #tpu.memory_space<vmem>>, vector<8x256xf32>
    tpu.vector_store %arg2[%c0_3, %c0_4], %7 {strides = array<i32>} : memref<8x256xf32, #tpu.memory_space<vmem>>, vector<8x256xf32>,
    return
  }
  func.func @transform_0(%arg0: i32) -> (i32, i32) {
    %c0_i32 = arith.constant 0 : i32
    %c0_i32_0 = arith.constant 0 : i32
    return %arg0, %c0_i32 : i32, i32
  }
  func.func @transform_1(%arg0: i32) -> (i32, i32) {
    %c0_i32 = arith.constant 0 : i32
    %c0_i32_0 = arith.constant 0 : i32
    return %arg0, %c0_i32 : i32, i32
  }
}

</mosaic_0001>

<bundles_post_ra>
// kernel: tpu_custom_call.1
= control target key start
LH: loop header
LB: loop body
LE: loop exit
PB: predicated region body
PF: predicated region fallthrough
CT: control target
= control target key end

     0   :  { %6 = vsyncpa [#allocation3], 0  ;;  %s116_s0 = inlined_call_operand.hbm [shape: f32[8,256], index: 0, kind: input, shape index: {}]   ;;  %s117_s1 = inlined_call_operand.hbm [shape: f32[8,256], index: 1, kind: output, shape index: {}]  }
   0x1   :  { %7 = vsyncpa [#allocation4], 0  ;;  %s98_s6 = smov [#allocation2]  }
   0x2   :  { %s14_s7 = sshll.u32 %s98_s6, 4  ;;  %s15_s7 = int_to_ptr.vmem [resolvable:$true] %s14_s7 }
   0x3   :  { %s62_s8 = scalar_lea.vmem %s15_s7, 256  ;;  %p67_p1 = scmp.lt.s32.totalorder %s15_s7, %s15_s7 }
   0x4   :  { %p63_p0 = scmp.ne.s32.totalorder %s15_s7, %s62_s8  ;;  %p68_p2 = scmp.lt.s32.totalorder %s62_s8, %s62_s8 }
   0x6   :  { %p69_p3 = por %p68_p2, %p67_p1 }
   0x8   :  { %p70_p4 = pnand %p69_p3, %p63_p0 }
   0xa   :  { %73 = shalt.err (!%p70_p4)
}
   0xb   :  { %17 = dma.hbm_to_vmem [thread:$0]  %s116_s0, 256, %s15_s7, [#allocation3]  }
   0xc   :  { %94 = dma.done.wait [#allocation3], 256  }
   0xd   :  { %95 = vsyncadd [#allocation3], 4294967040  ;;  %v21_v0 = vld [vmem:[#allocation2] sm:$0xff]  ;;  %v22_v1 = vld [vmem:[#allocation2 + $0x8] sm:$0xff]  ;;  %s99_s11 = smov [#allocation5]  }
   0xe   :  { %v23_v2 = vmul.f32 0.5, %v21_v0  ;;  %v24_v3 = vmul.f32 0.5, %v22_v1  ;;  %s39_s12 = sshll.u32 %s99_s11, 4  ;;  %s40_s12 = int_to_ptr.vmem [resolvable:$true] %s39_s12 }
   0xf   :  { %s74_s0 = scalar_lea.vmem %s40_s12, 256  ;;  %p79_p6 = scmp.lt.s32.totalorder %s40_s12, %s40_s12 }
  0x10   :  { %50 = vtanh.f32 %v23_v2  ;;  %p75_p5 = scmp.ne.s32.totalorder %s40_s12, %s74_s0  ;;  %p80_p7 = scmp.lt.s32.totalorder %s74_s0, %s74_s0 }
  0x11   :  { %52 = vtanh.f32 %v24_v3 }
  0x12   :  { %p81_p8 = por %p80_p7, %p79_p6 }
  0x14   :  { %p82_p9 = pnand %p81_p8, %p75_p5 }
  0x1d   :  { %v51_v4 = vpop.eup %50 }
  0x1e   :  { %v53_v5 = vpop.eup %52  ;;  %v27_v6 = vadd.f32 1.0, %v51_v4 }
  0x1f   :  { %v28_v7 = vadd.f32 1.0, %v53_v5 }
  0x20   :  { %v29_v8 = vmul.f32 0.5, %v27_v6 }
  0x21   :  { %v30_v9 = vmul.f32 0.5, %v28_v7 }
  0x22   :  { %31 = vst [vmem:[#allocation5] sm:$0xff] %v29_v8 }
  0x23   :  { %32 = vst [vmem:[#allocation5 + $0x8] sm:$0xff] %v30_v9 }
  0x24   :  { %85 = shalt.err (!%p82_p9)
}
  0x25   :  { %42 = dma.vmem_to_hbm [thread:$0]  %s40_s12, 256, %s117_s1, [#allocation4]  }
  0x26   :  { %96 = dma.done.wait [#allocation4], 256  }
  0x27   :  { %97 = vsyncadd [#allocation4], 4294967040 }
  0x28   :  { %46 = vsyncpa [#allocation3], 1 }
  0x29   :  { %47 = vsyncpa [#allocation4], 1 }

</bundles_post_ra>
